<compile_context>
chip_gen: v7x
topology: tpu7x:2x2x1
jax: 0.10.0
libtpu: 0.0.40
codegen_flags: <defaults>
</compile_context>

<pallas_src>
import math

import jax
import jax.numpy as jnp
from jax.experimental import pallas as pl
from jax.experimental.pallas import tpu as pltpu


def _sq_err_kernel(xt_ref, xp_ref, o_ref):
    diff = xt_ref[...] - xp_ref[...]
    o_ref[...] = diff * diff


def _physical_vmem_bytes():
    phys = 128 * 1024 * 1024  # v5e / v6e physical VMEM per TC
    try:
        info = pltpu.get_tpu_info()
        phys = int(getattr(info, "vmem_capacity_bytes", phys)) or phys
    except Exception:
        pass
    return phys


def _lane_dense_view(shape):
    """Pick a (B, D) 2-D view of the input that keeps the last dim lane-dense."""
    n_total = int(math.prod(shape)) if len(shape) > 0 else 1
    if n_total > 0 and n_total % 128 == 0:
        for cand in (4096, 2048, 1024, 512, 384, 256, 128):
            if n_total % cand == 0:
                return n_total // cand, cand
    # Ragged fallback: keep the original last dim (masked stores, but correct).
    d = shape[-1] if len(shape) >= 1 else 1
    d = max(d, 1)
    return max(n_total // d, 1), d


def _plan_tiling(B, D, itemsize, vmem_budget_bytes, target_block_bytes):
    """Pick (block_rows, block_cols) for a memory-bound elementwise kernel."""
    # Sublane packing: 8 rows for 32-bit dtypes, 16 for 16-bit, 32 for 8-bit.
    sublane = 8 * max(1, 4 // max(1, itemsize))
    n_bufs = 6  # 2 inputs + 1 output, each double-buffered by the pipeline.

    # ---- column tile (lane axis) ----
    strip_bytes = n_bufs * sublane * D * itemsize  # one sublane-high strip, all bufs
    if D > 128 and strip_bytes > vmem_budget_bytes:
        cols_budget = vmem_budget_bytes // (n_bufs * sublane * itemsize)
        block_cols = max(128, (cols_budget // 128) * 128)
        if block_cols >= D:
            block_cols = D
    else:
        block_cols = D

    # ---- row tile (sublane axis), byte-targeted ----
    bytes_per_row = max(1, block_cols * itemsize)
    rows_target = max(sublane, target_block_bytes // bytes_per_row)
    rows_vmem_cap = max(sublane, vmem_budget_bytes // (n_bufs * bytes_per_row))
    block_rows = min(rows_target, rows_vmem_cap, B)

    # Keep at least 2 row-blocks when there is enough data so the "parallel"
    # grid axes can actually shard across v7x's two TensorCores.
    per_input_bytes = B * D * itemsize
    if block_cols == D and per_input_bytes > 2 * target_block_bytes:
        block_rows = min(block_rows, pl.cdiv(B, 2))

    if block_rows < B:
        # Partial blocks: keep the second-to-last dim a multiple of the dtype
        # packing factor for unmasked stores.
        block_rows = max(sublane, (block_rows // sublane) * sublane)
        block_rows = min(block_rows, B)

    return block_rows, block_cols


def ae_loss_module_forward(x_true, x_pred):
    """Pallas equivalent of AE_loss_module.forward: elementwise MSE (reduction='none')."""
    assert x_true.shape == x_pred.shape, "x_true / x_pred shape mismatch"
    assert x_true.dtype == x_pred.dtype, "x_true / x_pred dtype mismatch"

    orig_shape = x_true.shape
    n_total = int(math.prod(orig_shape)) if len(orig_shape) > 0 else 1
    if n_total == 0:
        return (x_true - x_pred) ** 2  # empty tensor: nothing to launch

    itemsize = jnp.dtype(x_true.dtype).itemsize

    # Lane-dense 2-D view (metadata-only reshape of a contiguous array).
    B, D = _lane_dense_view(orig_shape)
    xt2 = x_true.reshape(B, D)
    xp2 = x_pred.reshape(B, D)

    # Generation-aware VMEM working-set budget.
    phys_vmem = _physical_vmem_bytes()
    vmem_budget = min(24 * 1024 * 1024, phys_vmem // 3)
    target_block_bytes = 4 * 1024 * 1024  # per-input bytes per grid step

    block_rows, block_cols = _plan_tiling(
        B, D, itemsize, vmem_budget, target_block_bytes)

    grid = (pl.cdiv(B, block_rows), pl.cdiv(D, block_cols))
    spec = pl.BlockSpec((block_rows, block_cols), lambda i, j: (i, j))

    est_vmem = 6 * block_rows * block_cols * itemsize
    compiler_kwargs = dict(dimension_semantics=("parallel", "parallel"))
    if est_vmem > 14 * 1024 * 1024:
        # Explicit limit: above v5e's 16 MiB scoped default, below physical VMEM.
        compiler_kwargs["vmem_limit_bytes"] = int(
            min(phys_vmem - 8 * 1024 * 1024,
                max(32 * 1024 * 1024, est_vmem * 3 // 2)))

    cost = pl.CostEstimate(
        flops=2 * n_total,
        transcendentals=0,
        bytes_accessed=3 * n_total * itemsize,
    )

    out = pl.pallas_call(
        _sq_err_kernel,
        out_shape=jax.ShapeDtypeStruct((B, D), x_true.dtype),
        grid=grid,
        in_specs=[spec, spec],
        out_specs=spec,
        compiler_params=pltpu.CompilerParams(**compiler_kwargs),
        cost_estimate=cost,
    )(xt2, xp2)

    return out.reshape(orig_shape)


if __name__ == "__main__":
    # AE_loss_module has no learnable parameters; structure_config only feeds
    # the dead code after the early return, so it is not needed here.
    key = jax.random.PRNGKey(0)
    k1, k2, k3, k4, k5, k6 = jax.random.split(key, 6)

    # 1) Typical (batch, features) input, lane-dense reshape path (N % 128 == 0).
    batch, feat = 2, 4 * 16 * 16
    x_true = jax.random.normal(k1, (batch, feat), dtype=jnp.float32)
    x_pred = jax.random.normal(k2, (batch, feat), dtype=jnp.float32)
    out = jax.block_until_ready(ae_loss_module_forward(x_true, x_pred))
    ref = (x_true - x_pred) ** 2
    assert out.shape == (batch, feat)
    assert jnp.allclose(out, ref, atol=1e-6, rtol=1e-6)

    # 2) Narrow / ragged feature dim but N % 128 == 0 -> re-tiled lane-dense.
    b2, f2 = 40, 96
    y_true = jax.random.normal(k3, (b2, f2), dtype=jnp.float32)
    y_pred = jax.random.normal(k4, (b2, f2), dtype=jnp.float32)
    out2 = jax.block_until_ready(ae_loss_module_forward(y_true, y_pred))
    ref2 = (y_true - y_pred) ** 2
    assert out2.shape == (b2, f2)
    assert jnp.allclose(out2, ref2, atol=1e-6, rtol=1e-6)

    # 3) Fully ragged tiny shape (N % 128 != 0) -> fallback (B, D) path.
    b3, f3 = 7, 13
    z_true = jax.random.normal(k5, (b3, f3), dtype=jnp.float32)
    z_pred = jax.random.normal(k6, (b3, f3), dtype=jnp.float32)
    out3 = jax.block_until_ready(ae_loss_module_forward(z_true, z_pred))
    ref3 = (z_true - z_pred) ** 2
    assert out3.shape == (b3, f3)
    assert jnp.allclose(out3, ref3, atol=1e-6, rtol=1e-6)

    print("KERNEL_OK")
</pallas_src>

<mosaic_0001>
module attributes {stable_mosaic.version = 11 : i64} {
  func.func @_sq_err_kernel(%arg0: i32, %arg1: i32, %arg2: memref<1x2048xf32, #tpu.memory_space<vmem>>, %arg3: memref<1x2048xf32, #tpu.memory_space<vmem>>, %arg4: memref<1x2048xf32, #tpu.memory_space<vmem>>) attributes {dimension_semantics = [#tpu.dimension_semantics<parallel>, #tpu.dimension_semantics<parallel>], iteration_bounds = array<i64: 1, 1>, scalar_prefetch = 0 : i64, scratch_operands = 0 : i64, tpu.core_type = #tpu.core_type<tc>, window_params = [{transform_indices = @transform_0, window_bounds = array<i64: 1, 2048>}, {transform_indices = @transform_1, window_bounds = array<i64: 1, 2048>}, {transform_indices = @transform_2, window_bounds = array<i64: 1, 2048>}]} {
    %c0 = arith.constant 0 : index
    %c0_0 = arith.constant 0 : index
    %0 = vector.load %arg2[%c0, %c0_0] : memref<1x2048xf32, #tpu.memory_space<vmem>>, vector<1x2048xf32>
    %c0_1 = arith.constant 0 : index
    %c0_2 = arith.constant 0 : index
    %1 = vector.load %arg3[%c0_1, %c0_2] : memref<1x2048xf32, #tpu.memory_space<vmem>>, vector<1x2048xf32>
    %2 = arith.subf %0, %1 : vector<1x2048xf32>
    %3 = arith.mulf %2, %2 : vector<1x2048xf32>
    %c0_3 = arith.constant 0 : index
    %c0_4 = arith.constant 0 : index
    %4 = vector.load %arg4[%c0_3, %c0_4] : memref<1x2048xf32, #tpu.memory_space<vmem>>, vector<1x2048xf32>
    tpu.vector_store %arg4[%c0_3, %c0_4], %3 {strides = array<i32>} : memref<1x2048xf32, #tpu.memory_space<vmem>>, vector<1x2048xf32>,
    return
  }
  func.func @transform_0(%arg0: i32, %arg1: i32) -> (i32, i32) {
    %c0_i32 = arith.constant 0 : i32
    return %arg0, %arg1 : i32, i32
  }
  func.func @transform_1(%arg0: i32, %arg1: i32) -> (i32, i32) {
    %c0_i32 = arith.constant 0 : i32
    return %arg0, %arg1 : i32, i32
  }
  func.func @transform_2(%arg0: i32, %arg1: i32) -> (i32, i32) {
    %c0_i32 = arith.constant 0 : i32
    return %arg0, %arg1 : i32, i32
  }
}

</mosaic_0001>

<bundles_post_ra>
// kernel: tpu_custom_call.1
= control target key start
LH: loop header
LB: loop body
LE: loop exit
PB: predicated region body
PF: predicated region fallthrough
CT: control target
= control target key end

     0   :  { %7 = vsyncpa [#allocation3], 0  ;;  %s191_s0 = inlined_call_operand.hbm [shape: f32[1,2048], index: 0, kind: input, shape index: {}]   ;;  %s192_s1 = inlined_call_operand.hbm [shape: f32[1,2048], index: 1, kind: input, shape index: {}]   ;;  %s193_s2 = inlined_call_operand.hbm [shape: f32[1,2048], index: 2, kind: output, shape index: {}]  }
   0x1   :  { %8 = vsyncpa [#allocation6], 0 }
   0x2   :  { %9 = vsyncpa [#allocation4], 0  ;;  %s137_s9 = smov [#allocation2]   ;;  %s138_s11 = smov [#allocation5]  }
   0x3   :  { %s16_s10 = sshll.u32 %s137_s9, 4  ;;  %s26_s12 = sshll.u32 %s138_s11, 4  ;;  %s17_s10 = int_to_ptr.vmem [resolvable:$true] %s16_s10  ;;  %s27_s12 = int_to_ptr.vmem [resolvable:$true] %s26_s12 }
   0x4   :  { %s65_s15 = scalar_lea.hbm %s191_s0, 256 }
   0x5   :  { %p66_p0 = scmp.ne.s32.totalorder %s191_s0, %s65_s15  ;;  %p69_p1 = scmp.lt.u32.totalorder %s65_s15, %s191_s0 }
   0x7   :  { %p71_p2 = pnand %p69_p1, %p66_p0 }
   0x9   :  { %74 = shalt.err (!%p71_p2)
}
   0xa   :  { %s75_s20 = scalar_lea.vmem %s17_s10, 256  ;;  %p80_p4 = scmp.lt.s32.totalorder %s17_s10, %s17_s10 }
   0xb   :  { %p76_p3 = scmp.ne.s32.totalorder %s17_s10, %s75_s20  ;;  %p81_p5 = scmp.lt.s32.totalorder %s75_s20, %s75_s20 }
   0xd   :  { %p82_p6 = por %p81_p5, %p80_p4 }
   0xf   :  { %p83_p7 = pnand %p82_p6, %p76_p3 }
  0x11   :  { %86 = shalt.err (!%p83_p7)
}
  0x12   :  { %19 = dma.hbm_to_vmem [thread:$0]  %s191_s0, 256, %s17_s10, [#allocation3]  }
  0x13   :  { %s87_s25 = scalar_lea.hbm %s192_s1, 256 }
  0x14   :  { %p88_p8 = scmp.ne.s32.totalorder %s192_s1, %s87_s25  ;;  %p91_p9 = scmp.lt.u32.totalorder %s87_s25, %s192_s1 }
  0x16   :  { %p93_p10 = pnand %p91_p9, %p88_p8 }
  0x18   :  { %96 = shalt.err (!%p93_p10)
}
  0x19   :  { %s97_s30 = scalar_lea.vmem %s27_s12, 256  ;;  %p102_p12 = scmp.lt.s32.totalorder %s27_s12, %s27_s12 }
  0x1a   :  { %p98_p11 = scmp.ne.s32.totalorder %s27_s12, %s97_s30  ;;  %p103_p13 = scmp.lt.s32.totalorder %s97_s30, %s97_s30 }
  0x1c   :  { %p104_p0 = por %p103_p13, %p102_p12 }
  0x1e   :  { %p105_p1 = pnand %p104_p0, %p98_p11 }
  0x20   :  { %108 = shalt.err (!%p105_p1)
}
  0x21   :  { %29 = dma.hbm_to_vmem [thread:$0]  %s192_s1, 256, %s27_s12, [#allocation6]  }
  0x22   :  { %131 = dma.done.wait [#allocation3], 256  }
  0x23   :  { %132 = vsyncadd [#allocation3], 4294967040 }
  0x24   :  { %133 = dma.done.wait [#allocation6], 256  }
  0x25   :  { %134 = vsyncadd [#allocation6], 4294967040  ;;  %v36_v0 = vld [vmem:[#allocation2] sm:$0xff]  ;;  %v38_v1 = vld [vmem:[#allocation5] sm:$0xff]  ;;  %s139_s4 = smov [#allocation7]  }
  0x26   :  { %v37_v2 = vld [vmem:[#allocation2 + $0x8] sm:$0xff]  ;;  %v40_v3 = vsub.f32 %v36_v0, %v38_v1  ;;  %v39_v4 = vld [vmem:[#allocation5 + $0x8] sm:$0xff]  ;;  %s52_s5 = sshll.u32 %s139_s4, 4  ;;  %s53_s5 = int_to_ptr.vmem [resolvable:$true] %s52_s5 }
  0x27   :  { %v41_v5 = vsub.f32 %v37_v2, %v39_v4  ;;  %s109_s6 = scalar_lea.vmem %s53_s5, 256  ;;  %p114_p3 = scmp.lt.s32.totalorder %s53_s5, %s53_s5 }
  0x28   :  { %v42_v6 = vmul.f32 %v40_v3, %v40_v3  ;;  %p110_p2 = scmp.ne.s32.totalorder %s53_s5, %s109_s6  ;;  %p115_p4 = scmp.lt.s32.totalorder %s109_s6, %s109_s6 }
  0x29   :  { %v43_v7 = vmul.f32 %v41_v5, %v41_v5 }
  0x2a   :  { %44 = vst [vmem:[#allocation7] sm:$0xff] %v42_v6  ;;  %p116_p5 = por %p115_p4, %p114_p3 }
  0x2b   :  { %45 = vst [vmem:[#allocation7 + $0x8] sm:$0xff] %v43_v7 }
  0x2c   :  { %p117_p6 = pnand %p116_p5, %p110_p2 }
  0x2e   :  { %120 = shalt.err (!%p117_p6)
}
  0x2f   :  { %s121_s8 = scalar_lea.hbm %s193_s2, 256 }
  0x30   :  { %p122_p7 = scmp.ne.s32.totalorder %s193_s2, %s121_s8  ;;  %p125_p8 = scmp.lt.u32.totalorder %s121_s8, %s193_s2 }
  0x32   :  { %p127_p9 = pnand %p125_p8, %p122_p7 }
  0x34   :  { %130 = shalt.err (!%p127_p9)
}
  0x35   :  { %55 = dma.vmem_to_hbm [thread:$0]  %s53_s5, 256, %s193_s2, [#allocation4]  }
  0x36   :  { %135 = dma.done.wait [#allocation4], 256  }
  0x37   :  { %136 = vsyncadd [#allocation4], 4294967040 }
  0x38   :  { %59 = vsyncpa [#allocation3], 1 }
  0x39   :  { %60 = vsyncpa [#allocation6], 1 }
  0x3a   :  { %61 = vsyncpa [#allocation4], 1 }

</bundles_post_ra>
